<compile_context>
chip_gen: v7x
topology: tpu7x:2x2x1
jax: 0.10.0
libtpu: 0.0.40
codegen_flags: <defaults>
</compile_context>

<pallas_src>
import jax
import jax.numpy as jnp
from jax.experimental import pallas as pl
from jax.experimental.pallas import tpu as pltpu  # noqa: F401  (TPU backend)

K_PAD = 128                 # lane-aligned padded width for every layer
N_BLOCKS = 3                # fc1, fc2, fc3
W_COLS = K_PAD * N_BLOCKS   # 384
ROW_PAD = 8                 # sublane-aligned padded batch

# true layer dims: (in_features, out_features)
LAYER_DIMS = [(100, 50), (50, 25), (25, 8)]


def mlp_kernel(x_ref, w_ref, b_ref, o_ref):
    # x_ref: (8, 128)   w_ref: (128, 384)   b_ref: (8, 384)   o_ref: (8, 128)
    # Zero padding in w/b guarantees padded rows/cols never contaminate the
    # live (B, 8) output block; garbage in padded batch rows is sliced away
    # by the wrapper.
    # fc1 + relu
    h = jnp.dot(x_ref[...], w_ref[:, 0:128], preferred_element_type=jnp.float32)
    h = jnp.maximum(h + b_ref[:, 0:128], 0.0)
    # fc2 + relu
    h = jnp.dot(h, w_ref[:, 128:256], preferred_element_type=jnp.float32)
    h = jnp.maximum(h + b_ref[:, 128:256], 0.0)
    # fc3 (no activation)
    h = jnp.dot(h, w_ref[:, 256:384], preferred_element_type=jnp.float32)
    o_ref[...] = (h + b_ref[:, 256:384]).astype(o_ref.dtype)


def pack_params(params):
    """Pack (w1,b1,w2,b2,w3,b3) into one weight slab and one bias slab.

    w_packed: (128, 384) f32 — layer i lives in columns [i*128, i*128+out_i),
              rows [0, in_i); everything else zero.
    b_packed: (8, 384)  f32 — layer i bias replicated across the 8 sublanes
              in columns [i*128, i*128+out_i); everything else zero.
    """
    w1, b1, w2, b2, w3, b3 = params
    w_packed = jnp.zeros((K_PAD, W_COLS), jnp.float32)
    b_packed = jnp.zeros((ROW_PAD, W_COLS), jnp.float32)
    for i, (w, b) in enumerate(((w1, b1), (w2, b2), (w3, b3))):
        kin, kout = w.shape
        col0 = i * K_PAD
        w_packed = w_packed.at[:kin, col0:col0 + kout].set(w)
        b_packed = b_packed.at[:, col0:col0 + kout].set(
            jnp.broadcast_to(b.reshape(1, kout), (ROW_PAD, kout)))
    return w_packed, b_packed


def net_forward(x, w_packed, b_packed):
    """x: (B, C, H, W) float32 with C*H*W == 100.  Returns (B, 8) float32."""
    B = x.shape[0]
    x_flat = x.reshape(B, -1)                       # torch.flatten(x, 1)
    f_in = x_flat.shape[1]
    assert f_in == LAYER_DIMS[0][0], f"expected 100 features, got {f_in}"
    assert B <= ROW_PAD, f"this single-tile kernel supports B <= {ROW_PAD}"

    # Zero-pad the batch into a single (8, 128) vreg tile.
    x_pad = jnp.zeros((ROW_PAD, K_PAD), jnp.float32).at[:B, :f_in].set(x_flat)

    full = lambda shape: pl.BlockSpec(shape, lambda: (0,) * len(shape))

    out_pad = pl.pallas_call(
        mlp_kernel,
        out_shape=jax.ShapeDtypeStruct((ROW_PAD, K_PAD), jnp.float32),
        grid=(),
        in_specs=[full(x_pad.shape), full(w_packed.shape), full(b_packed.shape)],
        out_specs=full((ROW_PAD, K_PAD)),
    )(x_pad, w_packed, b_packed)

    return out_pad[:B, :LAYER_DIMS[-1][1]]


def init_params(key):
    """Deterministic init mimicking nn.Linear default (uniform +/- 1/sqrt(fan_in)).
    Weights stored as (in_features, out_features) so the kernel does y = x @ W + b."""
    params = []
    for i, (fan_in, fan_out) in enumerate(LAYER_DIMS):
        kw, kb, key = jax.random.split(jax.random.fold_in(key, i), 3)
        bound = 1.0 / jnp.sqrt(fan_in)
        w = jax.random.uniform(kw, (fan_in, fan_out), jnp.float32, -bound, bound)
        b = jax.random.uniform(kb, (1, fan_out), jnp.float32, -bound, bound)
        params += [w, b]
    return tuple(params)


def reference_forward(x, params):
    w1, b1, w2, b2, w3, b3 = params
    xf = x.reshape(x.shape[0], -1)
    h1 = jnp.maximum(xf @ w1 + b1, 0.0)
    h2 = jnp.maximum(h1 @ w2 + b2, 0.0)
    return h2 @ w3 + b3


if __name__ == "__main__":
    key = jax.random.PRNGKey(0)
    kx, kp = jax.random.split(key)
    # B=2, C=4, H=W=5  -> flatten gives 4*5*5 = 100 features, as fc1 expects.
    x = jax.random.normal(kx, (2, 4, 5, 5), jnp.float32)
    params = init_params(kp)
    w_packed, b_packed = pack_params(params)

    out = net_forward(x, w_packed, b_packed)
    out = jax.block_until_ready(out)

    ref = reference_forward(x, params)
    assert out.shape == (2, 8), out.shape
    assert jnp.allclose(out, ref, atol=1e-5, rtol=1e-5), "mismatch vs reference"
    print("KERNEL_OK")
</pallas_src>

<mosaic_0001>
module attributes {stable_mosaic.version = 11 : i64} {
  func.func @mlp_kernel(%arg0: memref<8x128xf32, #tpu.memory_space<vmem>>, %arg1: memref<128x384xf32, #tpu.memory_space<vmem>>, %arg2: memref<8x384xf32, #tpu.memory_space<vmem>>, %arg3: memref<8x128xf32, #tpu.memory_space<vmem>>) attributes {dimension_semantics = [], scalar_prefetch = 0 : i64, scratch_operands = 0 : i64, tpu.core_type = #tpu.core_type<tc>} {
    %c0 = arith.constant 0 : index
    %c0_0 = arith.constant 0 : index
    %0 = vector.load %arg0[%c0, %c0_0] : memref<8x128xf32, #tpu.memory_space<vmem>>, vector<8x128xf32>
    %c0_1 = arith.constant 0 : index
    %c0_2 = arith.constant 0 : index
    %1 = vector.load %arg1[%c0_1, %c0_2] : memref<128x384xf32, #tpu.memory_space<vmem>>, vector<128x128xf32>
    %cst = arith.constant dense<0.000000e+00> : vector<8x128xf32>
    %2 = tpu.matmul %0, %1, %cst {dimension_numbers = #tpu.dot_dimension_numbers<[1], [0], [0], [1], [0, 0, 1, 1], [], []>} : vector<8x128xf32>, vector<128x128xf32>, vector<8x128xf32> -> vector<8x128xf32>
    %c0_3 = arith.constant 0 : index
    %c0_4 = arith.constant 0 : index
    %3 = vector.load %arg2[%c0_3, %c0_4] : memref<8x384xf32, #tpu.memory_space<vmem>>, vector<8x128xf32>
    %4 = arith.addf %2, %3 : vector<8x128xf32>
    %cst_5 = arith.constant 0.000000e+00 : f32
    %5 = vector.broadcast %cst_5 : f32 to vector<8x128xf32>
    %6 = arith.maximumf %4, %5 : vector<8x128xf32>
    %c0_6 = arith.constant 0 : index
    %c128 = arith.constant 128 : index
    %7 = vector.load %arg1[%c0_6, %c128] : memref<128x384xf32, #tpu.memory_space<vmem>>, vector<128x128xf32>
    %cst_7 = arith.constant dense<0.000000e+00> : vector<8x128xf32>
    %8 = tpu.matmul %6, %7, %cst_7 {dimension_numbers = #tpu.dot_dimension_numbers<[1], [0], [0], [1], [0, 0, 1, 1], [], []>} : vector<8x128xf32>, vector<128x128xf32>, vector<8x128xf32> -> vector<8x128xf32>
    %c0_8 = arith.constant 0 : index
    %c128_9 = arith.constant 128 : index
    %9 = vector.load %arg2[%c0_8, %c128_9] : memref<8x384xf32, #tpu.memory_space<vmem>>, vector<8x128xf32>
    %10 = arith.addf %8, %9 : vector<8x128xf32>
    %cst_10 = arith.constant 0.000000e+00 : f32
    %11 = vector.broadcast %cst_10 : f32 to vector<8x128xf32>
    %12 = arith.maximumf %10, %11 : vector<8x128xf32>
    %c0_11 = arith.constant 0 : index
    %c256 = arith.constant 256 : index
    %13 = vector.load %arg1[%c0_11, %c256] : memref<128x384xf32, #tpu.memory_space<vmem>>, vector<128x128xf32>
    %cst_12 = arith.constant dense<0.000000e+00> : vector<8x128xf32>
    %14 = tpu.matmul %12, %13, %cst_12 {dimension_numbers = #tpu.dot_dimension_numbers<[1], [0], [0], [1], [0, 0, 1, 1], [], []>} : vector<8x128xf32>, vector<128x128xf32>, vector<8x128xf32> -> vector<8x128xf32>
    %c0_13 = arith.constant 0 : index
    %c256_14 = arith.constant 256 : index
    %15 = vector.load %arg2[%c0_13, %c256_14] : memref<8x384xf32, #tpu.memory_space<vmem>>, vector<8x128xf32>
    %16 = arith.addf %14, %15 : vector<8x128xf32>
    %c0_15 = arith.constant 0 : index
    %c0_16 = arith.constant 0 : index
    %17 = vector.load %arg3[%c0_15, %c0_16] : memref<8x128xf32, #tpu.memory_space<vmem>>, vector<8x128xf32>
    tpu.vector_store %arg3[%c0_15, %c0_16], %16 {strides = array<i32>} : memref<8x128xf32, #tpu.memory_space<vmem>>, vector<8x128xf32>,
    return
  }
}

</mosaic_0001>

<bundles_post_ra>
// kernel: tpu_custom_call.1
= control target key start
LH: loop header
LB: loop body
LE: loop exit
PB: predicated region body
PF: predicated region fallthrough
CT: control target
= control target key end

     0   :  { %8 = vsyncpa [#allocation3], 0  ;;  %s771_s0 = inlined_call_operand.hbm [shape: f32[8,128], index: 0, kind: input, shape index: {}]   ;;  %s772_s1 = inlined_call_operand.hbm [shape: f32[128,384], index: 1, kind: input, shape index: {}]   ;;  %s773_s2 = inlined_call_operand.hbm [shape: f32[8,384], index: 2, kind: input, shape index: {}]   ;;  %s774_s3 = inlined_call_operand.hbm [shape: f32[8,128], index: 3, kind: output, shape index: {}]  }
   0x1   :  { %9 = vsyncpa [#allocation6], 0 }
   0x2   :  { %10 = vsyncpa [#allocation4], 0  ;;  %s664_s12 = smov [#allocation5]   ;;  %s570_s16 = scalar_lea.hbm %s772_s1, 6144 }
   0x3   :  { %s26_s13 = sshll.u32 %s664_s12, 4  ;;  %p571_p0 = scmp.ne.s32.totalorder %s772_s1, %s570_s16  ;;  %s27_s13 = int_to_ptr.vmem [resolvable:$true] %s26_s13 }
   0x4   :  { %p574_p1 = scmp.lt.u32.totalorder %s570_s16, %s772_s1 }
   0x6   :  { %p576_p2 = pnand %p574_p1, %p571_p0 }
   0x8   :  { %579 = shalt.err (!%p576_p2)
}
   0x9   :  { %s580_s21 = scalar_lea.vmem %s27_s13, 6144  ;;  %p585_p4 = scmp.lt.s32.totalorder %s27_s13, %s27_s13 }
   0xa   :  { %p581_p3 = scmp.ne.s32.totalorder %s27_s13, %s580_s21  ;;  %p586_p5 = scmp.lt.s32.totalorder %s580_s21, %s580_s21 }
   0xc   :  { %p587_p6 = por %p586_p5, %p585_p4 }
   0xe   :  { %p588_p7 = pnand %p587_p6, %p581_p3 }
  0x10   :  { %591 = shalt.err (!%p588_p7)
}
  0x11   :  { %s665_s22 = smov 384   ;;  %s666_s23 = smov 24  }
  0x12   :  { %32 = dma.hbm_to_vmem [thread:$0]  %s772_s1, 6144, %s27_s13, [#allocation6], %s665_s22, %s665_s22, %s666_s23  }
  0x13   :  { %s667_s26 = smov [#allocation2]   ;;  %s668_s28 = smov [#allocation7]  }
  0x14   :  { %s17_s27 = sshll.u32 %s667_s26, 4  ;;  %s39_s29 = sshll.u32 %s668_s28, 4  ;;  %s18_s27 = int_to_ptr.vmem [resolvable:$true] %s17_s27  ;;  %s40_s29 = int_to_ptr.vmem [resolvable:$true] %s39_s29 }
  0x15   :  { %s592_s5 = scalar_lea.hbm %s771_s0, 128 }
  0x16   :  { %p593_p8 = scmp.ne.s32.totalorder %s771_s0, %s592_s5  ;;  %p596_p9 = scmp.lt.u32.totalorder %s592_s5, %s771_s0 }
  0x18   :  { %p598_p10 = pnand %p596_p9, %p593_p8 }
  0x1a   :  { %601 = shalt.err (!%p598_p10)
}
  0x1b   :  { %s602_s1 = scalar_lea.vmem %s18_s27, 128  ;;  %p607_p12 = scmp.lt.s32.totalorder %s18_s27, %s18_s27 }
  0x1c   :  { %p603_p11 = scmp.ne.s32.totalorder %s18_s27, %s602_s1  ;;  %p608_p13 = scmp.lt.s32.totalorder %s602_s1, %s602_s1 }
  0x1e   :  { %p609_p0 = por %p608_p13, %p607_p12 }
  0x20   :  { %p610_p1 = pnand %p609_p0, %p603_p11 }
  0x22   :  { %613 = shalt.err (!%p610_p1)
}
  0x23   :  { %20 = dma.hbm_to_vmem [thread:$0]  %s771_s0, 128, %s18_s27, [#allocation3]  }
  0x24   :  { %s614_s14 = scalar_lea.hbm %s773_s2, 384 }
  0x25   :  { %p615_p2 = scmp.ne.s32.totalorder %s773_s2, %s614_s14  ;;  %p618_p3 = scmp.lt.u32.totalorder %s614_s14, %s773_s2 }
  0x27   :  { %p620_p4 = pnand %p618_p3, %p615_p2 }
  0x29   :  { %623 = shalt.err (!%p620_p4)
}
  0x2a   :  { %s624_s19 = scalar_lea.vmem %s40_s29, 384  ;;  %p629_p6 = scmp.lt.s32.totalorder %s40_s29, %s40_s29 }
  0x2b   :  { %p625_p5 = scmp.ne.s32.totalorder %s40_s29, %s624_s19  ;;  %p630_p7 = scmp.lt.s32.totalorder %s624_s19, %s624_s19 }
  0x2d   :  { %p631_p8 = por %p630_p7, %p629_p6 }
  0x2f   :  { %p632_p9 = pnand %p631_p8, %p625_p5 }
  0x31   :  { %635 = shalt.err (!%p632_p9)
}
  0x32   :  { %42 = dma.hbm_to_vmem [thread:$0]  %s773_s2, 384, %s40_s29, [#allocation6]  }
  0x33   :  { %658 = dma.done.wait [#allocation3], 128  }
  0x34   :  { %659 = vsyncadd [#allocation3], 4294967168 }
  0x35   :  { %660 = dma.done.wait [#allocation6], 6528  }
  0x36   :  { %661 = vsyncadd [#allocation6], 4294960768  ;;  %v669_v0 = vmov 0.0|0.0   ;;  %vm670_vm0 = vmmov 0   ;;  %v671_v1 = vmov 0.0   ;;  %v53_v2 = vld [vmem:[#allocation5] sm:$0xff] }
  0x37   :  { %489 = vmatprep.subr.bf16.mxu0 %v669_v0  ;;  %416 = vmatprep.mubr.msk.f32.mxu0 %vm670_vm0, %v671_v1  ;;  %v54_v3 = vld [vmem:[#allocation5 + $0x18] sm:$0xff]  ;;  %v55_v4 = vld [vmem:[#allocation5 + $0x30] sm:$0xff]  ;;  %v56_v6 = vld [vmem:[#allocation5 + $0x48] sm:$0xff]  ;;  %s672_s2 = smov [#allocation8]  }
  0x38   :  { %513 = vmatprep.subr.bf16.mxu1 %v669_v0  ;;  %451 = vmatprep.mubr.msk.f32.mxu1 %vm670_vm0, %v671_v1  ;;  %v490_v5 = vpack.c.bf16 %v54_v3, %v53_v2  ;;  %v493_v7 = vpack.c.bf16 %v56_v6, %v55_v4  ;;  %v57_v8 = vld [vmem:[#allocation5 + $0x60] sm:$0xff]  ;;  %v58_v9 = vld [vmem:[#allocation5 + $0x78] sm:$0xff]  ;;  %v141_v10 = vld [vmem:[#allocation5 + $0x8] sm:$0xff]  ;;  %s323_s21 = sshll.u32 %s672_s2, 4  ;;  %s324_s21 = int_to_ptr.vmem [resolvable:$true] %s323_s21 }
  0x39   :  { %v142_v11 = vld [vmem:[#allocation5 + $0x20] sm:$0xff]  ;;  %v143_v12 = vld [vmem:[#allocation5 + $0x38] sm:$0xff]  ;;  %v144_v13 = vld [vmem:[#allocation5 + $0x50] sm:$0xff]  ;;  %v496_v14 = vpack.c.bf16 %v58_v9, %v57_v8  ;;  %s636_s22 = scalar_lea.vmem %s324_s21, 128  ;;  %p641_p11 = scmp.lt.s32.totalorder %s324_s21, %s324_s21 }
  0x3a   :  { %491 = vmatpush3.bf16.msra.mxu0 %v490_v5  ;;  %v514_v15 = vpack.c.bf16 %v142_v11, %v141_v10  ;;  %v59_v16 = vld [vmem:[#allocation5 + $0x90] sm:$0xff]  ;;  %v60_v17 = vld [vmem:[#allocation5 + $0xa8] sm:$0xff]  ;;  %v517_v18 = vpack.c.bf16 %v144_v13, %v143_v12  ;;  %v146_v20 = vld [vmem:[#allocation5 + $0x80] sm:$0xff]  ;;  %p637_p10 = scmp.ne.s32.totalorder %s324_s21, %s636_s22  ;;  %p642_p12 = scmp.lt.s32.totalorder %s636_s22, %s636_s22 }
  0x3b   :  { %492 = vmatprep.subr.bf16.mxu0 %v669_v0  ;;  %v145_v19 = vld [vmem:[#allocation5 + $0x68] sm:$0xff]  ;;  %v499_v21 = vpack.c.bf16 %v60_v17, %v59_v16  ;;  %v61_v22 = vld [vmem:[#allocation5 + $0xc0] sm:$0xff]  ;;  %v62_v23 = vld [vmem:[#allocation5 + $0xd8] sm:$0xff] }
  0x3c   :  { %515 = vmatpush3.bf16.msra.mxu1 %v514_v15  ;;  %v520_v24 = vpack.c.bf16 %v146_v20, %v145_v19  ;;  %v147_v25 = vld [vmem:[#allocation5 + $0x98] sm:$0xff]  ;;  %v148_v26 = vld [vmem:[#allocation5 + $0xb0] sm:$0xff]  ;;  %v502_v27 = vpack.c.bf16 %v62_v23, %v61_v22  ;;  %v64_v29 = vld [vmem:[#allocation5 + $0x108] sm:$0xff]  ;;  %p643_p13 = por %p642_p12, %p641_p11 }
  0x3d   :  { %516 = vmatprep.subr.bf16.mxu1 %v669_v0  ;;  %v63_v28 = vld [vmem:[#allocation5 + $0xf0] sm:$0xff]  ;;  %v523_v30 = vpack.c.bf16 %v148_v26, %v147_v25  ;;  %v149_v31 = vld [vmem:[#allocation5 + $0xc8] sm:$0xff]  ;;  %v150_v32 = vld [vmem:[#allocation5 + $0xe0] sm:$0xff] }
  0x3e   :  { %494 = vmatpush3.bf16.msra.mxu0 %v493_v7  ;;  %v505_v33 = vpack.c.bf16 %v64_v29, %v63_v28  ;;  %v65_v34 = vld [vmem:[#allocation5 + $0x120] sm:$0xff]  ;;  %v66_v35 = vld [vmem:[#allocation5 + $0x138] sm:$0xff]  ;;  %v526_v36 = vpack.c.bf16 %v150_v32, %v149_v31  ;;  %v152_v38 = vld [vmem:[#allocation5 + $0x110] sm:$0xff]  ;;  %p644_p0 = pnand %p643_p13, %p637_p10 }
  0x3f   :  { %495 = vmatprep.subr.bf16.mxu0 %v669_v0  ;;  %v151_v37 = vld [vmem:[#allocation5 + $0xf8] sm:$0xff]  ;;  %v508_v39 = vpack.c.bf16 %v66_v35, %v65_v34  ;;  %v67_v40 = vld [vmem:[#allocation5 + $0x150] sm:$0xff]  ;;  %v68_v41 = vld [vmem:[#allocation5 + $0x168] sm:$0xff] }
  0x40   :  { %518 = vmatpush3.bf16.msra.mxu1 %v517_v18  ;;  %v529_v42 = vpack.c.bf16 %v152_v38, %v151_v37  ;;  %v153_v43 = vld [vmem:[#allocation5 + $0x128] sm:$0xff]  ;;  %v154_v44 = vld [vmem:[#allocation5 + $0x140] sm:$0xff]  ;;  %v511_v45 = vpack.c.bf16 %v68_v41, %v67_v40  ;;  %v52_v47 = vld [vmem:[#allocation2] sm:$0xff] }
  0x41   :  { %519 = vmatprep.subr.bf16.mxu1 %v669_v0  ;;  %v532_v46 = vpack.c.bf16 %v154_v44, %v153_v43  ;;  %v155_v48 = vld [vmem:[#allocation5 + $0x158] sm:$0xff]  ;;  %v156_v49 = vld [vmem:[#allocation5 + $0x170] sm:$0xff]  ;;  %v230_v52 = vld [vmem:[#allocation5 + $0x28] sm:$0xff] }
  0x42   :  { %497 = vmatpush3.bf16.msra.mxu0 %v496_v14  ;;  %v535_v50 = vpack.c.bf16 %v156_v49, %v155_v48  ;;  %v229_v51 = vld [vmem:[#allocation5 + $0x10] sm:$0xff]  ;;  %v231_v53 = vld [vmem:[#allocation5 + $0x40] sm:$0xff]  ;;  %v232_v55 = vld [vmem:[#allocation5 + $0x58] sm:$0xff] }
  0x43   :  { %498 = vmatprep.subr.bf16.mxu0 %v669_v0  ;;  %v538_v54 = vpack.c.bf16 %v230_v52, %v229_v51  ;;  %v541_v56 = vpack.c.bf16 %v232_v55, %v231_v53  ;;  %v233_v57 = vld [vmem:[#allocation5 + $0x70] sm:$0xff]  ;;  %v234_v58 = vld [vmem:[#allocation5 + $0x88] sm:$0xff]  ;;  %v235_v60 = vld [vmem:[#allocation5 + $0xa0] sm:$0xff] }
  0x44   :  { %521 = vmatpush3.bf16.msra.mxu1 %v520_v24  ;;  %v544_v59 = vpack.c.bf16 %v234_v58, %v233_v57  ;;  %v236_v61 = vld [vmem:[#allocation5 + $0xb8] sm:$0xff]  ;;  %v237_v63 = vld [vmem:[#allocation5 + $0xd0] sm:$0xff]  ;;  %v239_v3 = vld [vmem:[#allocation5 + $0x100] sm:$0xff] }
  0x45   :  { %522 = vmatprep.subr.bf16.mxu1 %v669_v0  ;;  %v547_v62 = vpack.c.bf16 %v236_v61, %v235_v60  ;;  %v240_v4 = vld [vmem:[#allocation5 + $0x118] sm:$0xff]  ;;  %v241_v6 = vld [vmem:[#allocation5 + $0x130] sm:$0xff]  ;;  %v242_v7 = vld [vmem:[#allocation5 + $0x148] sm:$0xff] }
  0x46   :  { %500 = vmatpush3.bf16.msra.mxu0 %v499_v21  ;;  %v553_v5 = vpack.c.bf16 %v240_v4, %v239_v3  ;;  %v556_v8 = vpack.c.bf16 %v242_v7, %v241_v6  ;;  %v69_v9 = vld [vmem:[#allocation7] sm:$0xff]  ;;  %v244_v15 = vld [vmem:[#allocation5 + $0x178] sm:$0xff]  ;;  %v157_v17 = vld [vmem:[#allocation7 + $0x8] sm:$0xff] }
  0x47   :  { %501 = vmatprep.subr.bf16.mxu0 %v669_v0  ;;  %v243_v14 = vld [vmem:[#allocation5 + $0x160] sm:$0xff]  ;;  %v245_v22 = vld [vmem:[#allocation7 + $0x10] sm:$0xff] }
  0x48   :  { %524 = vmatpush3.bf16.msra.mxu1 %v523_v30  ;;  %v559_v16 = vpack.c.bf16 %v244_v15, %v243_v14 }
  0x49   :  { %525 = vmatprep.subr.bf16.mxu1 %v669_v0 }
  0x4a   :  { %503 = vmatpush3.bf16.msra.mxu0 %v502_v27 }
  0x4b   :  { %504 = vmatprep.subr.bf16.mxu0 %v669_v0 }
  0x4c   :  { %527 = vmatpush3.bf16.msra.mxu1 %v526_v36 }
  0x4d   :  { %528 = vmatprep.subr.bf16.mxu1 %v669_v0 }
  0x4e   :  { %506 = vmatpush3.bf16.msra.mxu0 %v505_v33 }
  0x4f   :  { %507 = vmatprep.subr.bf16.mxu0 %v669_v0 }
  0x50   :  { %530 = vmatpush3.bf16.msra.mxu1 %v529_v42 }
  0x51   :  { %531 = vmatprep.subr.bf16.mxu1 %v669_v0 }
  0x52   :  { %509 = vmatpush3.bf16.msra.mxu0 %v508_v39 }
  0x53   :  { %510 = vmatprep.subr.bf16.mxu0 %v669_v0 }
  0x54   :  { %533 = vmatpush3.bf16.msra.mxu1 %v532_v46 }
  0x55   :  { %534 = vmatprep.subr.bf16.mxu1 %v669_v0 }
  0x56   :  { %512 = vmatpush3.bf16.msra.mxu0 %v511_v45 }
  0x57   :  { %537 = vmatprep.subr.bf16.mxu0 %v669_v0 }
  0x58   :  { %536 = vmatpush3.bf16.msra.mxu1 %v535_v50 }
  0x59   :  { %417 = vmatmul.mubr.f32.vlgmr.msra.gmra.mrb[0].mxu0 %v52_v47 }
  0x5a   :  { %486 = vmatprep.mubr.msk.f32.mxu0 %vm670_vm0, %v671_v1  ;;  %539 = vmatpush3.bf16.msra.mxu0 %v538_v54  ;;  %v238_v1 = vld [vmem:[#allocation5 + $0xe8] sm:$0xff] }
  0x5b   :  { %540 = vmatprep.subr.bf16.mxu0 %v669_v0  ;;  %v550_v2 = vpack.c.bf16 %v238_v1, %v237_v63 }
  0x5e   :  { %542 = vmatpush3.bf16.msra.mxu0 %v541_v56 }
  0x5f   :  { %543 = vmatprep.subr.bf16.mxu0 %v669_v0 }
  0x62   :  { %545 = vmatpush3.bf16.msra.mxu0 %v544_v59 }
  0x63   :  { %546 = vmatprep.subr.bf16.mxu0 %v669_v0 }
  0x66   :  { %548 = vmatpush3.bf16.msra.mxu0 %v547_v62 }
  0x67   :  { %549 = vmatprep.subr.bf16.mxu0 %v669_v0 }
  0x6a   :  { %551 = vmatpush3.bf16.msra.mxu0 %v550_v2 }
  0x6b   :  { %552 = vmatprep.subr.bf16.mxu0 %v669_v0 }
  0x6e   :  { %554 = vmatpush3.bf16.msra.mxu0 %v553_v5 }
  0x6f   :  { %555 = vmatprep.subr.bf16.mxu0 %v669_v0 }
  0x72   :  { %557 = vmatpush3.bf16.msra.mxu0 %v556_v8 }
  0x73   :  { %558 = vmatprep.subr.bf16.mxu0 %v669_v0 }
  0x76   :  { %560 = vmatpush3.bf16.msra.mxu0 %v559_v16 }
 0x12c   :  { %v136_v10 = vpop.f32.mrb[0].mxu0 }
 0x12d   :  { %v137_v11 = vadd.f32 %v136_v10, %v69_v9  ;;  %v418_v12 = vpop.f32.mrb[1].mxu0 }
 0x12f   :  { %v140_v13 = vmax.f32 %v137_v11, 0.0 }
 0x131   :  { %452 = vmatmul.mubr.f32.vlgmr.msra.gmra.mrb[0].mxu1 %v140_v13 }
 0x204   :  { %v224_v18 = vpop.f32.mrb[0].mxu1 }
 0x205   :  { %v225_v19 = vadd.f32 %v224_v18, %v157_v17  ;;  %v453_v20 = vpop.f32.mrb[1].mxu1 }
 0x207   :  { %v228_v21 = vmax.f32 %v225_v19, 0.0 }
 0x209   :  { %487 = vmatmul.mubr.f32.vlgmr.msra.gmra.mrb[2].mxu0 %v228_v21 }
 0x2dc   :  { %v312_v0 = vpop.f32.mrb[2].mxu0 }
 0x2dd   :  { %v313_v23 = vadd.f32 %v312_v0, %v245_v22  ;;  %v488_v24 = vpop.f32.mrb[3].mxu0 }
 0x2df   :  { %316 = vst [vmem:[#allocation8] sm:$0xff] %v313_v23 }
 0x2e0   :  { %647 = shalt.err (!%p644_p0)
}
 0x2e1   :  { %s648_s25 = scalar_lea.hbm %s774_s3, 128 }
 0x2e2   :  { %p649_p1 = scmp.ne.s32.totalorder %s774_s3, %s648_s25  ;;  %p652_p2 = scmp.lt.u32.totalorder %s648_s25, %s774_s3 }
 0x2e4   :  { %p654_p3 = pnand %p652_p2, %p649_p1 }
 0x2e6   :  { %657 = shalt.err (!%p654_p3)
}
 0x2e7   :  { %326 = dma.vmem_to_hbm [thread:$0]  %s324_s21, 128, %s774_s3, [#allocation4]  }
 0x2e8   :  { %662 = dma.done.wait [#allocation4], 128  }
 0x2e9   :  { %663 = vsyncadd [#allocation4], 4294967168 }
 0x2ea   :  { %330 = vsyncpa [#allocation3], 1 }
 0x2eb   :  { %331 = vsyncpa [#allocation6], 1 }
 0x2ec   :  { %332 = vsyncpa [#allocation4], 1 }

</bundles_post_ra>
